<compile_context>
chip_gen: v7x
topology: tpu7x:2x2x1
jax: 0.10.0
libtpu: 0.0.40
codegen_flags: <defaults>
</compile_context>

<pallas_src>
import jax
import jax.numpy as jnp
from jax.experimental import pallas as pl
from jax.experimental.pallas import tpu as pltpu


# --------------------------------------------------------------------------- #
# Kernels
# --------------------------------------------------------------------------- #
def _make_kernel(C, O, use_vpu, c_aligned):
    """Build the kernel body for given channel counts / compute path."""

    def _store(out_ref, x, conv):
        if c_aligned:
            # C (and hence the start of the conv rows) is sublane-aligned:
            # two direct, unmasked stores -- no concat intermediate.
            out_ref[pl.ds(0, C), :] = x.astype(out_ref.dtype)
            out_ref[pl.ds(C, O), :] = conv.astype(out_ref.dtype)
        else:
            # Misaligned split: one full lane-dense store of the whole block.
            out_ref[...] = jnp.concatenate(
                [x.astype(out_ref.dtype), conv.astype(out_ref.dtype)], axis=0
            )

    if use_vpu:
        # w_ref: SMEM (O, C), b_ref: SMEM (O,)
        def kernel(x_ref, w_ref, b_ref, out_ref):
            x = x_ref[...]                                   # (C, T)
            xf = x.astype(jnp.float32)
            rows = []
            for o in range(O):                               # tiny, fully unrolled
                acc = xf[0:1, :] * w_ref[o, 0]
                for c in range(1, C):
                    acc = acc + xf[c : c + 1, :] * w_ref[o, c]
                rows.append(acc + b_ref[o])
            conv = jnp.concatenate(rows, axis=0)             # (O, T) f32
            _store(out_ref, x, conv)

    else:
        # w_ref: VMEM (O, C), b_ref: VMEM (O, 1)
        def kernel(x_ref, w_ref, b_ref, out_ref):
            x = x_ref[...]                                   # (C, T)
            conv = (
                jnp.dot(w_ref[...], x, preferred_element_type=jnp.float32)
                + b_ref[...]
            )                                                # (O, T) f32
            _store(out_ref, x, conv)

    return kernel


# --------------------------------------------------------------------------- #
# Tiling helpers
# --------------------------------------------------------------------------- #
def _round_up(x, m):
    return ((x + m - 1) // m) * m


def _round_down(x, m):
    return (x // m) * m


def _vmem_capacity_bytes():
    """Physical VMEM per core; conservative fallback (v7x = 64 MiB/TC)."""
    try:
        return int(pltpu.get_tpu_info().vmem_capacity_bytes)
    except Exception:
        return 64 * 1024 * 1024


def _pick_hw_tile(hw, c, o, itemsize, batch, io_budget_bytes):
    """Largest 128-multiple spatial tile whose double-buffered in+out footprint
    fits `io_budget_bytes`, capped so B==1 still yields >= 2 grid steps."""
    row_bytes = (2 * c + o) * itemsize            # x row + out row per lane
    max_by_vmem = io_budget_bytes // (2 * row_bytes)   # double-buffered
    tile = min(max_by_vmem, _round_up(hw, 128))
    if batch == 1 and hw > 128:
        # Keep >= 2 total grid steps so both TensorCores get work on v7x.
        tile = min(tile, _round_up(pl.cdiv(hw, 2), 128))
    tile = max(128, _round_down(tile, 128))
    return tile


# --------------------------------------------------------------------------- #
# Wrapper
# --------------------------------------------------------------------------- #
def mrp_block(x_nchw, weights, biases, *, hw_tile=None):
    """
    x_nchw:  (B, C, H, W) float32
    weights: list of 4 arrays, each (ocp, C)   -- 1x1 conv weights per branch
    biases:  list of 4 arrays, each (ocp,)     -- 1x1 conv biases per branch
    returns: (B, C + 4*ocp, H, W) float32
    """
    B, C, H, W = x_nchw.shape
    HW = H * W
    dtype = x_nchw.dtype
    itemsize = jnp.dtype(dtype).itemsize

    # Stack branch params: four 1x1 convs -> one (O, C) weight / (O,) bias.
    w_stack = jnp.concatenate([jnp.asarray(w) for w in weights], axis=0)   # (O, C)
    b_stack = jnp.concatenate([jnp.asarray(b) for b in biases], axis=0)    # (O,)
    O = w_stack.shape[0]

    # --- per-generation tile / VMEM budgeting -------------------------------
    vmem_cap = _vmem_capacity_bytes()
    io_budget = int(vmem_cap * 0.4)               # double-buffered in+out budget
    if hw_tile is None:
        hw_tile = _pick_hw_tile(HW, C, O, itemsize, B, io_budget)
    else:
        hw_tile = max(128, _round_down(int(hw_tile), 128))
    n_hw = pl.cdiv(HW, hw_tile)                   # ragged last block is masked

    io_bytes = 2 * (2 * C + O) * hw_tile * itemsize        # double-buffered I/O
    param_bytes = 2 * (O * C + O) * itemsize
    vmem_limit = io_bytes + param_bytes + (4 << 20)        # + headroom
    vmem_limit = int(min(max(vmem_limit, 32 << 20), int(vmem_cap * 0.9)))

    # --- compute / store path selection --------------------------------------
    sublane = 32 // itemsize                       # 8 for f32, 16 for bf16
    c_aligned = (C % sublane == 0)
    use_vpu = (C <= 16 and O <= 16)                # tiny matmul -> VPU FMAs

    kernel = _make_kernel(C, O, use_vpu, c_aligned)

    x_spec = pl.BlockSpec((pl.Squeezed(), C, hw_tile), lambda b, s: (b, 0, s))
    out_spec = pl.BlockSpec((pl.Squeezed(), C + O, hw_tile), lambda b, s: (b, 0, s))
    if use_vpu:
        w_arg, b_arg = w_stack, b_stack                     # (O, C), (O,)
        w_spec = pl.BlockSpec(memory_space=pltpu.MemorySpace.SMEM)
        b_spec = pl.BlockSpec(memory_space=pltpu.MemorySpace.SMEM)
    else:
        w_arg, b_arg = w_stack, b_stack[:, None]            # (O, C), (O, 1)
        w_spec = pl.BlockSpec((O, C), lambda b, s: (0, 0))
        b_spec = pl.BlockSpec((O, 1), lambda b, s: (0, 0))

    cost = pl.CostEstimate(
        flops=2 * B * O * C * HW,
        transcendentals=0,
        bytes_accessed=(B * C * HW + B * (C + O) * HW) * itemsize
        + (O * C + O) * itemsize,
    )

    x_flat = x_nchw.reshape(B, C, HW)

    out = pl.pallas_call(
        kernel,
        out_shape=jax.ShapeDtypeStruct((B, C + O, HW), dtype),
        grid_spec=pltpu.PrefetchScalarGridSpec(
            num_scalar_prefetch=0,
            grid=(B, n_hw),
            in_specs=[x_spec, w_spec, b_spec],
            out_specs=out_spec,
        ),
        compiler_params=pltpu.CompilerParams(
            # Both axes fully independent -> megacore sharding on v7x.
            dimension_semantics=("parallel", "parallel"),
            vmem_limit_bytes=vmem_limit,
        ),
        cost_estimate=cost,
    )(x_flat, w_arg, b_arg)

    return out.reshape(B, C + O, H, W)


# --------------------------------------------------------------------------- #
# Test
# --------------------------------------------------------------------------- #
def _reference(x, weights, biases):
    convs = [
        jnp.einsum("oc,bchw->bohw", w, x) + b[None, :, None, None]
        for w, b in zip(weights, biases)
    ]
    return jnp.concatenate([x] + convs, axis=1)


def _make_params(key, c, ocp, n_branches=4):
    bound = 1.0 / jnp.sqrt(jnp.float32(c))
    keys = jax.random.split(key, 2 * n_branches)
    weights = [
        jax.random.uniform(keys[2 * i], (ocp, c), jnp.float32, -bound, bound)
        for i in range(n_branches)
    ]
    biases = [
        jax.random.uniform(keys[2 * i + 1], (ocp,), jnp.float32, -bound, bound)
        for i in range(n_branches)
    ]
    return weights, biases


if __name__ == "__main__":
    key = jax.random.PRNGKey(0)
    k1, k2, k3, k4 = jax.random.split(key, 4)

    # Test 1: small channels (VPU path, misaligned C -> concat store),
    #         forced hw_tile=128 to exercise the multi-tile grid (2, 2).
    B, C, H, W, ocp = 2, 4, 16, 16, 1
    x1 = jax.random.normal(k1, (B, C, H, W), dtype=jnp.float32)
    w1, b1 = _make_params(k2, C, ocp)
    out1 = jax.block_until_ready(mrp_block(x1, w1, b1, hw_tile=128))
    ref1 = _reference(x1, w1, b1)
    assert out1.shape == (B, C + 4 * ocp, H, W)
    assert jnp.allclose(out1, ref1, atol=1e-5, rtol=1e-5)

    # Test 2: larger channels (MXU path, aligned C -> two direct stores),
    #         B=1 with H*W=150 -> auto tile 128, grid (1, 2), ragged last block.
    B2, C2, H2, W2, ocp2 = 1, 32, 10, 15, 8
    x2 = jax.random.normal(k3, (B2, C2, H2, W2), dtype=jnp.float32)
    w2, b2 = _make_params(k4, C2, ocp2)
    out2 = jax.block_until_ready(mrp_block(x2, w2, b2))
    ref2 = _reference(x2, w2, b2)
    assert out2.shape == (B2, C2 + 4 * ocp2, H2, W2)
    assert jnp.allclose(out2, ref2, atol=1e-4, rtol=1e-4)

    print("KERNEL_OK")
</pallas_src>

<mosaic_0001>
module attributes {stable_mosaic.version = 11 : i64} {
  func.func @kernel(%arg0: i32, %arg1: i32, %arg2: memref<1x4x128xf32, #tpu.memory_space<vmem>>, %arg3: memref<4x4xf32, #tpu.memory_space<smem>>, %arg4: memref<4xf32, #tpu.memory_space<smem>>, %arg5: memref<1x8x128xf32, #tpu.memory_space<vmem>>) attributes {dimension_semantics = [#tpu.dimension_semantics<parallel>, #tpu.dimension_semantics<parallel>], iteration_bounds = array<i64: 2, 2>, scalar_prefetch = 0 : i64, scratch_operands = 0 : i64, tpu.core_type = #tpu.core_type<tc>, window_params = [{transform_indices = @transform_0, window_bounds = array<i64: 1, 4, 128>}, {transform_indices = @transform_1, window_bounds = array<i64: 4, 4>}, {transform_indices = @transform_2, window_bounds = array<i64: 4>}, {transform_indices = @transform_3, window_bounds = array<i64: 1, 8, 128>}]} {
    %c0 = arith.constant 0 : index
    %c0_0 = arith.constant 0 : index
    %c0_1 = arith.constant 0 : index
    %0 = vector.load %arg2[%c0, %c0_0, %c0_1] : memref<1x4x128xf32, #tpu.memory_space<vmem>>, vector<1x4x128xf32>
    %1 = vector.shape_cast %0 : vector<1x4x128xf32> to vector<4x128xf32>
    %2 = vector.extract_strided_slice %1 {offsets = [0, 0], sizes = [1, 128], strides = [1, 1]} : vector<4x128xf32> to vector<1x128xf32>
    %c0_2 = arith.constant 0 : index
    %c0_3 = arith.constant 0 : index
    %3 = memref.load %arg3[%c0_2, %c0_3] : memref<4x4xf32, #tpu.memory_space<smem>>
    %4 = vector.broadcast %3 : f32 to vector<1x128xf32>
    %5 = arith.mulf %2, %4 : vector<1x128xf32>
    %6 = vector.extract_strided_slice %1 {offsets = [1, 0], sizes = [1, 128], strides = [1, 1]} : vector<4x128xf32> to vector<1x128xf32>
    %c0_4 = arith.constant 0 : index
    %c1 = arith.constant 1 : index
    %7 = memref.load %arg3[%c0_4, %c1] : memref<4x4xf32, #tpu.memory_space<smem>>
    %8 = vector.broadcast %7 : f32 to vector<1x128xf32>
    %9 = arith.mulf %6, %8 : vector<1x128xf32>
    %10 = arith.addf %5, %9 : vector<1x128xf32>
    %11 = vector.extract_strided_slice %1 {offsets = [2, 0], sizes = [1, 128], strides = [1, 1]} : vector<4x128xf32> to vector<1x128xf32>
    %c0_5 = arith.constant 0 : index
    %c2 = arith.constant 2 : index
    %12 = memref.load %arg3[%c0_5, %c2] : memref<4x4xf32, #tpu.memory_space<smem>>
    %13 = vector.broadcast %12 : f32 to vector<1x128xf32>
    %14 = arith.mulf %11, %13 : vector<1x128xf32>
    %15 = arith.addf %10, %14 : vector<1x128xf32>
    %16 = vector.extract_strided_slice %1 {offsets = [3, 0], sizes = [1, 128], strides = [1, 1]} : vector<4x128xf32> to vector<1x128xf32>
    %c0_6 = arith.constant 0 : index
    %c3 = arith.constant 3 : index
    %17 = memref.load %arg3[%c0_6, %c3] : memref<4x4xf32, #tpu.memory_space<smem>>
    %18 = vector.broadcast %17 : f32 to vector<1x128xf32>
    %19 = arith.mulf %16, %18 : vector<1x128xf32>
    %20 = arith.addf %15, %19 : vector<1x128xf32>
    %c0_7 = arith.constant 0 : index
    %21 = memref.load %arg4[%c0_7] : memref<4xf32, #tpu.memory_space<smem>>
    %22 = vector.broadcast %21 : f32 to vector<1x128xf32>
    %23 = arith.addf %20, %22 : vector<1x128xf32>
    %24 = vector.extract_strided_slice %1 {offsets = [0, 0], sizes = [1, 128], strides = [1, 1]} : vector<4x128xf32> to vector<1x128xf32>
    %c1_8 = arith.constant 1 : index
    %c0_9 = arith.constant 0 : index
    %25 = memref.load %arg3[%c1_8, %c0_9] : memref<4x4xf32, #tpu.memory_space<smem>>
    %26 = vector.broadcast %25 : f32 to vector<1x128xf32>
    %27 = arith.mulf %24, %26 : vector<1x128xf32>
    %28 = vector.extract_strided_slice %1 {offsets = [1, 0], sizes = [1, 128], strides = [1, 1]} : vector<4x128xf32> to vector<1x128xf32>
    %c1_10 = arith.constant 1 : index
    %c1_11 = arith.constant 1 : index
    %29 = memref.load %arg3[%c1_10, %c1_11] : memref<4x4xf32, #tpu.memory_space<smem>>
    %30 = vector.broadcast %29 : f32 to vector<1x128xf32>
    %31 = arith.mulf %28, %30 : vector<1x128xf32>
    %32 = arith.addf %27, %31 : vector<1x128xf32>
    %33 = vector.extract_strided_slice %1 {offsets = [2, 0], sizes = [1, 128], strides = [1, 1]} : vector<4x128xf32> to vector<1x128xf32>
    %c1_12 = arith.constant 1 : index
    %c2_13 = arith.constant 2 : index
    %34 = memref.load %arg3[%c1_12, %c2_13] : memref<4x4xf32, #tpu.memory_space<smem>>
    %35 = vector.broadcast %34 : f32 to vector<1x128xf32>
    %36 = arith.mulf %33, %35 : vector<1x128xf32>
    %37 = arith.addf %32, %36 : vector<1x128xf32>
    %38 = vector.extract_strided_slice %1 {offsets = [3, 0], sizes = [1, 128], strides = [1, 1]} : vector<4x128xf32> to vector<1x128xf32>
    %c1_14 = arith.constant 1 : index
    %c3_15 = arith.constant 3 : index
    %39 = memref.load %arg3[%c1_14, %c3_15] : memref<4x4xf32, #tpu.memory_space<smem>>
    %40 = vector.broadcast %39 : f32 to vector<1x128xf32>
    %41 = arith.mulf %38, %40 : vector<1x128xf32>
    %42 = arith.addf %37, %41 : vector<1x128xf32>
    %c1_16 = arith.constant 1 : index
    %43 = memref.load %arg4[%c1_16] : memref<4xf32, #tpu.memory_space<smem>>
    %44 = vector.broadcast %43 : f32 to vector<1x128xf32>
    %45 = arith.addf %42, %44 : vector<1x128xf32>
    %46 = vector.extract_strided_slice %1 {offsets = [0, 0], sizes = [1, 128], strides = [1, 1]} : vector<4x128xf32> to vector<1x128xf32>
    %c2_17 = arith.constant 2 : index
    %c0_18 = arith.constant 0 : index
    %47 = memref.load %arg3[%c2_17, %c0_18] : memref<4x4xf32, #tpu.memory_space<smem>>
    %48 = vector.broadcast %47 : f32 to vector<1x128xf32>
    %49 = arith.mulf %46, %48 : vector<1x128xf32>
    %50 = vector.extract_strided_slice %1 {offsets = [1, 0], sizes = [1, 128], strides = [1, 1]} : vector<4x128xf32> to vector<1x128xf32>
    %c2_19 = arith.constant 2 : index
    %c1_20 = arith.constant 1 : index
    %51 = memref.load %arg3[%c2_19, %c1_20] : memref<4x4xf32, #tpu.memory_space<smem>>
    %52 = vector.broadcast %51 : f32 to vector<1x128xf32>
    %53 = arith.mulf %50, %52 : vector<1x128xf32>
    %54 = arith.addf %49, %53 : vector<1x128xf32>
    %55 = vector.extract_strided_slice %1 {offsets = [2, 0], sizes = [1, 128], strides = [1, 1]} : vector<4x128xf32> to vector<1x128xf32>
    %c2_21 = arith.constant 2 : index
    %c2_22 = arith.constant 2 : index
    %56 = memref.load %arg3[%c2_21, %c2_22] : memref<4x4xf32, #tpu.memory_space<smem>>
    %57 = vector.broadcast %56 : f32 to vector<1x128xf32>
    %58 = arith.mulf %55, %57 : vector<1x128xf32>
    %59 = arith.addf %54, %58 : vector<1x128xf32>
    %60 = vector.extract_strided_slice %1 {offsets = [3, 0], sizes = [1, 128], strides = [1, 1]} : vector<4x128xf32> to vector<1x128xf32>
    %c2_23 = arith.constant 2 : index
    %c3_24 = arith.constant 3 : index
    %61 = memref.load %arg3[%c2_23, %c3_24] : memref<4x4xf32, #tpu.memory_space<smem>>
    %62 = vector.broadcast %61 : f32 to vector<1x128xf32>
    %63 = arith.mulf %60, %62 : vector<1x128xf32>
    %64 = arith.addf %59, %63 : vector<1x128xf32>
    %c2_25 = arith.constant 2 : index
    %65 = memref.load %arg4[%c2_25] : memref<4xf32, #tpu.memory_space<smem>>
    %66 = vector.broadcast %65 : f32 to vector<1x128xf32>
    %67 = arith.addf %64, %66 : vector<1x128xf32>
    %68 = vector.extract_strided_slice %1 {offsets = [0, 0], sizes = [1, 128], strides = [1, 1]} : vector<4x128xf32> to vector<1x128xf32>
    %c3_26 = arith.constant 3 : index
    %c0_27 = arith.constant 0 : index
    %69 = memref.load %arg3[%c3_26, %c0_27] : memref<4x4xf32, #tpu.memory_space<smem>>
    %70 = vector.broadcast %69 : f32 to vector<1x128xf32>
    %71 = arith.mulf %68, %70 : vector<1x128xf32>
    %72 = vector.extract_strided_slice %1 {offsets = [1, 0], sizes = [1, 128], strides = [1, 1]} : vector<4x128xf32> to vector<1x128xf32>
    %c3_28 = arith.constant 3 : index
    %c1_29 = arith.constant 1 : index
    %73 = memref.load %arg3[%c3_28, %c1_29] : memref<4x4xf32, #tpu.memory_space<smem>>
    %74 = vector.broadcast %73 : f32 to vector<1x128xf32>
    %75 = arith.mulf %72, %74 : vector<1x128xf32>
    %76 = arith.addf %71, %75 : vector<1x128xf32>
    %77 = vector.extract_strided_slice %1 {offsets = [2, 0], sizes = [1, 128], strides = [1, 1]} : vector<4x128xf32> to vector<1x128xf32>
    %c3_30 = arith.constant 3 : index
    %c2_31 = arith.constant 2 : index
    %78 = memref.load %arg3[%c3_30, %c2_31] : memref<4x4xf32, #tpu.memory_space<smem>>
    %79 = vector.broadcast %78 : f32 to vector<1x128xf32>
    %80 = arith.mulf %77, %79 : vector<1x128xf32>
    %81 = arith.addf %76, %80 : vector<1x128xf32>
    %82 = vector.extract_strided_slice %1 {offsets = [3, 0], sizes = [1, 128], strides = [1, 1]} : vector<4x128xf32> to vector<1x128xf32>
    %c3_32 = arith.constant 3 : index
    %c3_33 = arith.constant 3 : index
    %83 = memref.load %arg3[%c3_32, %c3_33] : memref<4x4xf32, #tpu.memory_space<smem>>
    %84 = vector.broadcast %83 : f32 to vector<1x128xf32>
    %85 = arith.mulf %82, %84 : vector<1x128xf32>
    %86 = arith.addf %81, %85 : vector<1x128xf32>
    %c3_34 = arith.constant 3 : index
    %87 = memref.load %arg4[%c3_34] : memref<4xf32, #tpu.memory_space<smem>>
    %88 = vector.broadcast %87 : f32 to vector<1x128xf32>
    %89 = arith.addf %86, %88 : vector<1x128xf32>
    %90 = tpu.concatenate %23, %45, %67, %89 in 0 : vector<1x128xf32>, vector<1x128xf32>, vector<1x128xf32>, vector<1x128xf32> -> vector<4x128xf32>
    %91 = tpu.concatenate %1, %90 in 0 : vector<4x128xf32>, vector<4x128xf32> -> vector<8x128xf32>
    %c0_35 = arith.constant 0 : index
    %c0_36 = arith.constant 0 : index
    %c0_37 = arith.constant 0 : index
    %92 = vector.load %arg5[%c0_35, %c0_36, %c0_37] : memref<1x8x128xf32, #tpu.memory_space<vmem>>, vector<1x8x128xf32>
    %93 = vector.shape_cast %92 : vector<1x8x128xf32> to vector<8x128xf32>
    %94 = vector.shape_cast %91 : vector<8x128xf32> to vector<1x8x128xf32>
    tpu.vector_store %arg5[%c0_35, %c0_36, %c0_37], %94 {strides = array<i32>} : memref<1x8x128xf32, #tpu.memory_space<vmem>>, vector<1x8x128xf32>,
    return
  }
  func.func @transform_0(%arg0: i32, %arg1: i32) -> (i32, i32, i32) {
    %c0_i32 = arith.constant 0 : i32
    %c0_i32_0 = arith.constant 0 : i32
    return %arg0, %c0_i32, %arg1 : i32, i32, i32
  }
  func.func @transform_1(%arg0: i32, %arg1: i32) -> (i32, i32) {
    %c0_i32 = arith.constant 0 : i32
    %c0_i32_0 = arith.constant 0 : i32
    %c0_i32_1 = arith.constant 0 : i32
    return %c0_i32, %c0_i32_0 : i32, i32
  }
  func.func @transform_2(%arg0: i32, %arg1: i32) -> i32 {
    %c0_i32 = arith.constant 0 : i32
    %c0_i32_0 = arith.constant 0 : i32
    return %c0_i32 : i32
  }
  func.func @transform_3(%arg0: i32, %arg1: i32) -> (i32, i32, i32) {
    %c0_i32 = arith.constant 0 : i32
    %c0_i32_0 = arith.constant 0 : i32
    return %arg0, %c0_i32, %arg1 : i32, i32, i32
  }
}

</mosaic_0001>

<bundles_post_ra>
// kernel: tpu_custom_call.1
= control target key start
LH: loop header
LB: loop body
LE: loop exit
PB: predicated region body
PF: predicated region fallthrough
CT: control target
= control target key end

     0   :  { %s1111_s0 = inlined_call_operand.hbm [shape: f32[2,4,256], index: 0, kind: input, shape index: {}]   ;;  %s1112_s1 = inlined_call_operand.hbm [shape: f32[4,4], index: 1, kind: input, shape index: {}]   ;;  %s1113_s2 = inlined_call_operand.vmem [shape: f32[4], index: 2, kind: input, shape index: {}]   ;;  %s1114_s3 = inlined_call_operand.hbm [shape: f32[2,8,256], index: 3, kind: output, shape index: {}]  }
   0x1   :  { %1121 = sst [smem:[#allocation16_spill]] %s1112_s1 }
   0x2   :  { %1122 = sst [smem:[#allocation17_spill]] %s1113_s2 }
   0x3   :  { %8 = vsyncpa [#allocation3], 0 }
   0x4   :  { %10 = vsyncpa [#allocation3 + $0x1], 0 }
   0x5   :  { %11 = vsyncpa [#allocation5], 0 }
   0x6   :  { %12 = vsyncpa [#allocation6], 0 }
   0x7   :  { %13 = vsyncpa [#allocation4], 0 }
   0x8   :  { %15 = vsyncpa [#allocation4 + $0x1], 0  ;;  %s810_s12 = smov 0   ;;  %s812_s13 = smov 0  }
   0x9   :  { %s814_s14 = smov 0   ;;  %s816_s15 = smov 0  }
   0xa   :  { %s818_s16 = smov 0   ;;  %s820_s17 = smov 0  }
   0xb   :  { %s822_s18 = smov 0   ;;  %s824_s19 = smov 0  }
   0xc LB: > { %s484_s20 = sadd.s32 4294967295, %s784_s19   ;;  %s485_s21 = sadd.s32 4294967294, %s784_s19   ;;  %s784_s19 = sphi %s824_s19, %s21_s19   ;;  %s780_s18 = sphi %s822_s18, %s1147_s18   ;;  %s776_s17 = sphi %s820_s17, %s1146_s17   ;;  %s772_s16 = sphi %s818_s16, %s1145_s16   ;;  %s768_s15 = sphi %s816_s15, %s1144_s15   ;;  %s764_s14 = sphi %s814_s14, %s1143_s14   ;;  %s760_s13 = sphi %s812_s13, %s1142_s13   ;;  %s756_s12 = sphi %s810_s12, %s1141_s12  }
   0xd   : > { %p55_p0 = scmp.ne.s32.totalorder %s760_s13, %s756_s12  ;;  %p856_p1 = scmp.eq.s32.totalorder %s484_s20, 0 }
   0xe   : > { %p129_p2 = scmp.eq.s32.totalorder %s485_s21, 3  ;;  %p486_p4 = scmp.ge.s32.totalorder %s784_s19, 1 }
   0xf   : > { %s1123_s22 = scalar_select %p856_p1, 1, 0 }
  0x10   : > { %p862_p3 = por %p856_p1, %p55_p0  ;;  %p867_p5 = por %p129_p2, %p55_p0 }
  0x11   : > { %p136_p6 = scmp.lt.s32.totalorder %s784_s19, 5  ;;  %s1128_s2 = sld [smem:[#allocation17_spill]] }
  0x12   : > { %s1124_s23 = scalar_select %p862_p3, 1, 0 }
  0x13   : > { %s1125_s24 = scalar_select %p867_p5, 1, 0 }
  0x14   : > { %p872_p7 = pnand %p486_p4, %p136_p6  ;;  %s1130_s1 = sld [smem:[#allocation16_spill]] }
  0x15   : > { %1126 = sst [smem:[#allocation14_spill]] %s1125_s24 }
  0x16   : > { %p533_p8 = pneg %p872_p7 }
  0x17   : > { %s158_s28 = sshll.u32 %s1128_s2, 4  ;;  %s159_s28 = int_to_ptr.vmem [resolvable:$true] %s158_s28 }
  0x18   : > { %p883_p9 = pnand %p533_p8, %p856_p1 }
  0x1a   : > { %s620_s5 = scalar_lea.hbm %s1130_s1, 64  ;;  %p622_p11 = pneg %p883_p9 }
  0x1b   : > { %p621_p10 = scmp.ne.s32.totalorder %s1130_s1, %s620_s5  ;;  %p627_p0 = scmp.lt.u32.totalorder %s620_s5, %s1130_s1 }
  0x1d   : > { %p623_p12 = pnand %p622_p11, %p621_p10 }
  0x1f   : > { %p624_p13 = pneg %p623_p12 }
  0x21   : > { %p629_p2 = pnand %p627_p0, %p624_p13 }
  0x23   : > { %632 = shalt.err (!%p629_p2)
}
  0x24   : > { %s786_s10 = smov [#allocation7]   ;;  %s633_s26 = scalar_lea.vmem %s159_s28, 16 }
  0x25   : > { %536 = dma.hbm_to_smem (!%p883_p9), %s1130_s1, 64, %s786_s10, [#allocation5]  }
  0x26   : > { %p634_p4 = scmp.ne.s32.totalorder %s159_s28, %s633_s26  ;;  %p641_p5 = scmp.lt.s32.totalorder %s159_s28, %s159_s28 }
  0x27   : > { %p642_p10 = scmp.lt.s32.totalorder %s633_s26, %s633_s26 }
  0x28   : > { %p636_p6 = pnand %p634_p4, %p622_p11 }
  0x29   : > { %p643_p12 = por %p642_p10, %p641_p5 }
  0x2a   : > { %p637_p8 = pneg %p636_p6 }
  0x2c   : > { %p644_p1 = pnand %p643_p12, %p637_p8 }
  0x2e   : > { %647 = shalt.err (!%p644_p1)
}
  0x2f   : > { %s787_s27 = smov [#allocation8]   ;;  %p123_p11 = scmp.eq.s32.totalorder %s484_s20, 3 }
  0x30   : > { %539 = dma.vmem_to_smem (!%p883_p9), %s159_s28, 16, %s787_s27, [#allocation6]  }
  0x31   : > { %s30_s30 = sadd.s32 1, %s776_s17  ;;  %s33_s4 = sadd.s32 1, %s780_s18 }
  0x32   : > { %p31_p1 = scmp.ge.s32.totalorder %s30_s30, 2  ;;  %p49_p5 = scmp.ne.s32.totalorder %s764_s14, %s760_s13 }
  0x33   : > { %p50_p13 = scmp.eq.s32.totalorder %s784_s19, 0  ;;  %s42_s5 = sadd.s32 1, %s764_s14 }
  0x34   : > { %s1149_s30 = smov (%p31_p1, %s30_s30), 0  ;;  %s1151_s4 = smov (!%p31_p1, %s33_s4), %s780_s18 }
  0x35   : > { %1131 = sst [smem:[#allocation15_spill]] %s1149_s30  ;;  %s38_s29 = ssub.s32 %s776_s17, %s1149_s30 }
  0x36   : > { %p35_p0 = scmp.ge.s32.totalorder %s1151_s4, 2  ;;  %p918_p9 = por %p123_p11, %p49_p5 }
  0x37   : > { %p922_p2 = por %p50_p13, %p49_p5  ;;  %s169_s6 = sand.u32 1, %s764_s14  }
  0x38   : > { %s1132_s28 = scalar_select %p918_p9, 1, 0 }
  0x39   : > { %s1153_s4 = smov (%p35_p0, %s1151_s4), 0  ;;  %p550_p4 = scmp.lt.s32.totalorder %s784_s19, 4 }
  0x3a   : > { %s490_s7 = sshll.u32 %s169_s6, 2  ;;  %s37_s8 = ssub.s32 %s780_s18, %s1153_s4 }
  0x3b   : > { %s39_s9 = sor.u32 %s38_s29, %s37_s8  ;;  %s491_s10 = sshll.u32 %s780_s18, 1 }
  0x3c   : > { %p40_p6 = scmp.eq.s32.totalorder %s39_s9, 0  ;;  %s178_s11 = sadd.s32 %s776_s17, %s491_s10 }
  0x3d   : > { %s492_s21 = sshll.u32 %s178_s11, 6  ;;  %s173_s26 = scalar_lea.vmem [#allocation2], %s490_s7 }
  0x3e   : > { %s182_s27 = sshll.u32 %s173_s26, 4  ;;  %s940_s24 = scalar_lea.hbm %s1111_s0, %s492_s21  ;;  %s942_s27 = int_to_ptr.vmem [resolvable:$true] %s182_s27 }
  0x3f   : > { %s935_s1 = scalar_select %p40_p6, %s764_s14, %s42_s5  }
  0x40   : > { %p948_p8 = pnand %p550_p4, %p922_p2  ;;  %s170_s5 = scalar_lea.sflag [#allocation3], %s169_s6 }
  0x41   : > { %s648_s7 = scalar_lea.hbm %s940_s24, 64  ;;  %s653_s20 = scalar_lea.hbm %s1111_s0, 256 }
  0x42   : > { %p649_p10 = scmp.ne.s32.totalorder %s940_s24, %s648_s7  ;;  %p650_p12 = pneg %p948_p8 }
  0x43   : > { %p654_p5 = scmp.lt.u32.totalorder %s940_s24, %s1111_s0  ;;  %p655_p13 = scmp.lt.u32.totalorder %s653_s20, %s648_s7 }
  0x44   : > { %p651_p11 = pnand %p650_p12, %p649_p10  ;;  %p657_p2 = scmp.lt.u32.totalorder %s648_s7, %s940_s24 }
  0x45   : > { %p656_p0 = por %p655_p13, %p654_p5 }
  0x46   : > { %p652_p1 = pneg %p651_p11 }
  0x47   : > { %p658_p4 = por %p657_p2, %p656_p0 }
  0x49   : > { %p659_p6 = pnand %p658_p4, %p652_p1 }
  0x4b   : > { %662 = shalt.err (!%p659_p6)
}
  0x4c   : > { %s663_s6 = scalar_lea.vmem %s942_s27, 64  ;;  %s788_s10 = smov [#allocation2]  }
  0x4d   : > { %p664_p10 = scmp.ne.s32.totalorder %s942_s27, %s663_s6  ;;  %s668_s11 = sshll.u32 %s788_s10, 4  ;;  %s669_s11 = int_to_ptr.vmem [resolvable:$false] %s668_s11 }
  0x4e   : > { %s670_s21 = scalar_lea.vmem %s669_s11, 128  ;;  %p671_p3 = scmp.lt.s32.totalorder %s942_s27, %s669_s11 }
  0x4f   : > { %p666_p11 = pnand %p664_p10, %p650_p12  ;;  %p672_p5 = scmp.lt.s32.totalorder %s670_s21, %s663_s6 }
  0x51   : > { %p667_p9 = pneg %p666_p11  ;;  %p673_p13 = por %p672_p5, %p671_p3 }
  0x53   : > { %p674_p0 = pnand %p673_p13, %p667_p9 }
  0x55   : > { %677 = shalt.err (!%p674_p0)
}
  0x56   : > { %543 = dma.hbm_to_vmem [thread:$0]  (!%p948_p8), %s940_s24, 64, %s942_s27, %s170_s5  }
  0x57   : > { %191 = sbr.rel (%p872_p7) target bundleno = 151 (0x97), region = 32  ;;  %s980_s26 = sand.u32 (!%p872_p7), 1, %s760_s13  }
  0x58   : > { %s494_s7 = sshll.u32 (!%p872_p7), %s980_s26, 2  ;;  %s194_s2 = scalar_lea.sflag (!%p872_p7), [#allocation3], %s980_s26 }
  0x59   : > { %s197_s30 = scalar_lea.vmem (!%p872_p7), [#allocation2], %s494_s7  ;;  %p1135_p3 = scmp.ne.s32.totalorder (!%p872_p7), %s1124_s23, 0 }
  0x5e   : > { %739 = dma.done.wait (%p1135_p3), %s194_s2, 64  }
  0x5f   : > { %741 = vsyncadd (%p1135_p3), %s194_s2, 4294967232  ;;  %p1136_p9 = scmp.ne.s32.totalorder %s1123_s22, 0 }
  0x61   : > { %743 = dma.done.wait (%p1136_p9), [#allocation5], 64  }
  0x62   : > { %745 = vsyncadd (%p1136_p9), [#allocation5], 4294967232 }
  0x63   : > { %747 = dma.done.wait (%p1136_p9), [#allocation6], 16  }
  0x64   : > { %749 = vsyncadd (%p1136_p9), [#allocation6], 4294967280 }
  0x65   : > { %210 = sfence }
  0x66   : > { %s230_s24 = sld [smem:[#allocation7]]  ;;  %s498_s25 = sld [smem:[#allocation7 + $0x1]]  ;;  %v1002_v1 = vld [vmem:[%s197_s30] sm:$0xf]  ;;  %vm347_vm0 = vcmask 1040384   ;;  %vm349_vm1 = vcmask 1041408  }
  0x67   : > { %s499_s27 = sld [smem:[#allocation7 + $0x2]]  ;;  %s500_s29 = sld [smem:[#allocation7 + $0x3]]  ;;  %vm351_vm2 = vcmask 1042432   ;;  %vm356_vm3 = vcmask 1043456  }
  0x68   : > { %s501_s5 = sld [smem:[#allocation7 + $0x80]]  ;;  %s502_s23 = sld [smem:[#allocation7 + $0x81]] }
  0x69   : > { %s503_s20 = sld [smem:[#allocation7 + $0x82]]  ;;  %s996_s8 = sld [smem:[#allocation7 + $0x83]] }
  0x6a   : > { %s998_s9 = sld [smem:[#allocation7 + $0x100]]  ;;  %s1000_s6 = sld [smem:[#allocation7 + $0x101]] }
  0x6b   : > { %s1004_s22 = sld [smem:[#allocation7 + $0x102]]  ;;  %s1006_s10 = sld [smem:[#allocation7 + $0x103]] }
  0x6c   : > { %v231_v0 = vstv %s230_s24  ;;  %v234_v2 = vstv %s498_s25  ;;  %s1010_s11 = sld [smem:[#allocation8 + $0x1]]  ;;  %s1012_s21 = sld [smem:[#allocation7 + $0x180]] }
  0x6d   : > { %v232_v3 = vmul.f32 %v231_v0, %v1002_v1  ;;  %v235_v4 = vmul.f32 %v234_v2, %v1002_v1  ;;  %v241_v5 = vstv %s499_s27  ;;  %v248_v6 = vstv %s500_s29  ;;  %s1016_s7 = sld [smem:[#allocation7 + $0x181]]  ;;  %s1018_s2 = sld [smem:[#allocation7 + $0x182]] }
  0x6e   : > { %v242_v7 = vmul.f32 %v241_v5, %v1002_v1  ;;  %v249_v8 = vmul.f32 %v248_v6, %v1002_v1  ;;  %v258_v9 = vstv %s501_s5  ;;  %v261_v11 = vstv %s502_s23  ;;  %s1023_s30 = sld [smem:[#allocation8]]  ;;  %s1027_s24 = sld [smem:[#allocation7 + $0x183]] }
  0x6f   : > { %v237_v10 = vrot.slane %v235_v4, 1  ;;  %v268_v12 = vstv %s503_s20  ;;  %v259_v14 = vmul.f32 %v258_v9, %v1002_v1  ;;  %v262_v15 = vmul.f32 %v261_v11, %v1002_v1  ;;  %s1034_s25 = sld [smem:[#allocation8 + $0x2]]  ;;  %s515_s27 = sld [smem:[#allocation8 + $0x3]] }
  0x70   : > { %v244_v13 = vrot.slane %v242_v7, 2  ;;  %v269_v16 = vmul.f32 %v268_v12, %v1002_v1  ;;  %v251_v18 = vrot.slane %v249_v8, 3  ;;  %v275_v19 = vstv %s996_s8  ;;  %s497_s29 = sshll.u32 %s980_s26, 3  ;;  %s517_s5 = sshll.u32 %s772_s16, 1 }
  0x71   : > { %v239_v17 = vadd.f32 %v237_v10, %v232_v3  ;;  %v285_v20 = vstv %s998_s9  ;;  %v264_v21 = vrot.slane %v262_v15, 1  ;;  %v276_v23 = vmul.f32 %v275_v19, %v1002_v1  ;;  %s371_s23 = sadd.s32 %s768_s15, %s517_s5  ;;  %s228_s20 = scalar_lea.vmem [#allocation9], %s497_s29 }
  0x72   : > { %v271_v22 = vrot.slane %v269_v16, 2  ;;  %v286_v24 = vmul.f32 %v285_v20, %v1002_v1  ;;  %v288_v26 = vstv %s1000_s6  ;;  %v295_v27 = vstv %s1004_s22  ;;  %s375_s8 = sshll.u32 %s228_s20, 4  ;;  %s518_s9 = sshll.u32 %s371_s23, 7  ;;  %s1053_s8 = int_to_ptr.vmem [resolvable:$true] %s375_s8 }
  0x73   : > { %v246_v25 = vadd.f32 %v244_v13, %v239_v17  ;;  %v302_v28 = vstv %s1006_s10  ;;  %v266_v29 = vadd.f32 %v264_v21, %v259_v14  ;;  %v278_v30 = vrot.slane %v276_v23, 3  ;;  %s1058_s22 = scalar_lea.hbm %s1114_s3, %s518_s9  ;;  %s360_s15 = scalar_lea.sflag [#allocation4], %s980_s26 }
  0x74   : > { %v289_v31 = vmul.f32 %v288_v26, %v1002_v1  ;;  %v296_v32 = vmul.f32 %v295_v27, %v1002_v1  ;;  %v282_v33 = vstv %s1010_s11  ;;  %v303_v34 = vmul.f32 %v302_v28, %v1002_v1  ;;  %s678_s10 = scalar_lea.vmem %s1053_s8, 128  ;;  %p1137_p8 = scmp.ne.s32.totalorder %s1132_s28, 0 }
  0x75   : > { %v312_v35 = vstv %s1012_s21  ;;  %v253_v36 = vadd.f32 %v251_v18, %v246_v25  ;;  %v273_v37 = vadd.f32 %v271_v22, %v266_v29  ;;  %v315_v42 = vstv %s1016_s7  ;;  %p679_p7 = scmp.ne.s32.totalorder %s1053_s8, %s678_s10  ;;  %s789_s11 = smov [#allocation9]  }
  0x76   : > { %v291_v38 = vrot.slane %v289_v31, 1  ;;  %v298_v39 = vrot.slane %v296_v32, 2  ;;  %v305_v40 = vrot.slane %v303_v34, 3  ;;  %v313_v41 = vmul.f32 %v312_v35, %v1002_v1  ;;  %s682_s21 = sshll.u32 %s789_s11, 4  ;;  %s683_s21 = int_to_ptr.vmem [resolvable:$false] %s682_s21 }
  0x77   : > { %v322_v43 = vstv %s1018_s2  ;;  %v280_v44 = vadd.f32 %v278_v30, %v273_v37  ;;  %v316_v46 = vmul.f32 %v315_v42, %v1002_v1  ;;  %v255_v48 = vstv %s1023_s30  ;;  %p680_p12 = pnand %p679_p7, %p1137_p8  ;;  %s684_s7 = scalar_lea.vmem %s683_s21, 256 }
  0x78   : > { %v293_v45 = vadd.f32 %v291_v38, %v286_v24  ;;  %v323_v47 = vmul.f32 %v322_v43, %v1002_v1  ;;  %v329_v49 = vstv %s1027_s24  ;;  %v309_v54 = vstv %s1034_s25  ;;  %p685_p2 = scmp.lt.s32.totalorder %s1053_s8, %s683_s21  ;;  %p686_p4 = scmp.lt.s32.totalorder %s684_s7, %s678_s10 }
  0x79   : > { %v283_v50 = vadd.f32 %v282_v33, %v280_v44  ;;  %v318_v52 = vrot.slane %v316_v46, 1  ;;  %v330_v55 = vmul.f32 %v329_v49, %v1002_v1  ;;  %v256_v56 = vadd.f32 %v255_v48, %v253_v36  ;;  %p681_p1 = pneg %p680_p12 }
  0x7a   : > { %v300_v51 = vadd.f32 %v298_v39, %v293_v45  ;;  %v325_v53 = vrot.slane %v323_v47, 2  ;;  %v336_v63 = vstv %s515_s27  ;;  %p687_p6 = por %p686_p4, %p685_p2 }
  0x7b   : > { %v320_v58 = vadd.f32 %v318_v52, %v313_v41  ;;  %v339_v59 = vrot.slane %v283_v50, 7  ;;  %v332_v60 = vrot.slane %v330_v55, 3 }
  0x7c   : > { %v307_v57 = vadd.f32 %v305_v40, %v300_v51  ;;  %p688_p10 = pnand %p687_p6, %p681_p1 }
  0x7d   : > { %v327_v62 = vadd.f32 %v325_v53, %v320_v58  ;;  %v348_v3 = vsel %vm347_vm0, %v256_v56, %v339_v59 }
  0x7e   : > { %v310_v61 = vadd.f32 %v309_v54, %v307_v57 }
  0x7f   : > { %v334_v0 = vadd.f32 %v332_v60, %v327_v62 }
  0x80   : > { %v342_v2 = vrot.slane %v310_v61, 6 }
  0x81   : > { %v337_v4 = vadd.f32 %v336_v63, %v334_v0 }
  0x82   : > { %v350_v5 = vsel %vm349_vm1, %v348_v3, %v342_v2 }
  0x83   : > { %v345_v6 = vrot.slane %v337_v4, 5 }
  0x85   : > { %v352_v7 = vsel %vm351_vm2, %v350_v5, %v345_v6 }
  0x86   : > { %v354_v8 = vrot.slane %v352_v7, 4 }
  0x88   : > { %v357_v9 = vsel %vm356_vm3, %v1002_v1, %v354_v8 }
  0x89   : > { %358 = vst [vmem:[%s228_s20] sm:$0xff] %v357_v9 }
  0x8a   : > { %691 = shalt.err (!%p688_p10)
}
  0x8b   : > { %s692_s26 = scalar_lea.hbm %s1058_s22, 128  ;;  %s696_s24 = scalar_lea.hbm %s1114_s3, 512 }
  0x8c   : > { %p693_p11 = scmp.ne.s32.totalorder %s1058_s22, %s692_s26  ;;  %p697_p0 = scmp.lt.u32.totalorder %s1058_s22, %s1114_s3 }
  0x8d   : > { %p698_p3 = scmp.lt.u32.totalorder %s696_s24, %s692_s26  ;;  %p700_p7 = scmp.lt.u32.totalorder %s692_s26, %s1058_s22 }
  0x8e   : > { %p694_p5 = pnand %p693_p11, %p1137_p8 }
  0x8f   : > { %p699_p9 = por %p698_p3, %p697_p0 }
  0x90   : > { %p695_p13 = pneg %p694_p5 }
  0x91   : > { %p701_p12 = por %p700_p7, %p699_p9 }
  0x93   : > { %p702_p1 = pnand %p701_p12, %p695_p13 }
  0x95   : > { %705 = shalt.err (!%p702_p1)
}
  0x96   : > { %531 = dma.vmem_to_hbm [thread:$0]  (%p1137_p8), %s1053_s8, 128, %s1058_s22, %s360_s15  }
  0x97 PF: > { %s1138_s29 = sld [smem:[#allocation14_spill]]  ;;  %p553_p2 = scmp.ge.s32.totalorder %s784_s19, 2 }
  0x98   : > { %s387_s5 = sand.u32 1, %s756_s12  }
  0x99   : > { %s388_s23 = scalar_lea.sflag [#allocation4], %s387_s5 }
  0x9d   : > { %p1139_p4 = scmp.ne.s32.totalorder %s1138_s29, 0 }
  0x9f   : > { %p545_p6 = pnand %p553_p2, %p1139_p4 }
  0xa1   : > { %751 = dma.done.wait (!%p545_p6), %s388_s23, 128  }
  0xa2   : > { %753 = vsyncadd (!%p545_p6), %s388_s23, 4294967168  ;;  %s21_s19 = sadd.s32 1, %s784_s19   ;;  %s1140_s28 = sld [smem:[#allocation15_spill]] }
  0xa3   : > { %p18_p10 = scmp.ge.s32.totalorder %s21_s19, 6   ;;  %s1141_s12 = smov %s760_s13 }
  0xa4   : > { %s1142_s13 = smov %s764_s14  ;;  %s1143_s14 = smov %s935_s1 }
  0xa5   : > { %s1144_s15 = smov %s776_s17  ;;  %s1145_s16 = smov %s780_s18 }
  0xa6   : > { %s1147_s18 = smov %s1153_s4  ;;  %20 = sbr.rel (!%p18_p10) target bundleno = 12 (0xc), region = 87 }
  0xa8   : > { %s1146_s17 = smov %s1140_s28 }
  0xad   :  { %393 = vsyncpa [#allocation3], 1 }
  0xae   :  { %395 = vsyncpa [#allocation3 + $0x1], 1 }
  0xaf   :  { %396 = vsyncpa [#allocation4], 1 }
  0xb0   :  { %398 = vsyncpa [#allocation4 + $0x1], 1 }
  0xb1   :  { %399 = vsyncpa [#allocation5], 1 }
  0xb2   :  { %401 = vsyncpa [#allocation5 + $0x1], 1 }
  0xb3   :  { %402 = vsyncpa [#allocation6], 1 }
  0xb4   :  { %404 = vsyncpa [#allocation6 + $0x1], 1 }

</bundles_post_ra>
